<compile_context>
chip_gen: v6e
topology: v6e:2x2x1
jax: 0.10.0
libtpu: 0.0.40
codegen_flags: <defaults>
</compile_context>

<pallas_src>
import jax
import jax.numpy as jnp
from jax.experimental import pallas as pl
from jax.experimental.pallas import tpu as pltpu


def _round_up(x, m):
    return (x + m - 1) // m * m


def _pca_kernel(x_ref, w_ref, b_ref, o_ref):
    # x_ref: (TILE_N, D)   VMEM, pipelined per grid step
    # w_ref: (D, K_pad)    VMEM, resident (constant index_map)
    # b_ref: (1, K_pad)    VMEM, resident (constant index_map)
    # o_ref: (TILE_N, K_pad) VMEM, lane-dense output tile
    o_ref[...] = (
        jnp.dot(x_ref[...], w_ref[...], preferred_element_type=jnp.float32)
        - b_ref[...]
    ).astype(o_ref.dtype)


def pca_transform(x, pca_mean, pca_comps, *, tile_n=512):
    """out = (x - pca_mean) @ pca_comps.T  via a row-tiled Pallas kernel."""
    x = jnp.asarray(x, jnp.float32)
    pca_mean = jnp.asarray(pca_mean, jnp.float32)
    pca_comps = jnp.asarray(pca_comps, jnp.float32)

    n, d = x.shape
    k, d2 = pca_comps.shape
    assert d == d2 and pca_mean.shape == (d,)

    # Lane-dense output: pad K up to a multiple of 128.
    k_pad = _round_up(k, 128)
    # Pre-transposed, zero-padded weight (D, K_pad): no in-kernel .T / XLU work.
    w = jnp.zeros((d, k_pad), jnp.float32).at[:, :k].set(pca_comps.T)
    # Fold the mean subtraction into a post-matmul bias of shape (1, K_pad).
    bias = (pca_mean @ w).reshape(1, k_pad)

    # Row tile: large enough to stream HBM near roofline, clipped for small N,
    # always a multiple of 8 (sublane constraint).
    tile_n = min(tile_n, _round_up(n, 8))
    n_pad = _round_up(n, tile_n)
    if n_pad != n:
        x = jnp.zeros((n_pad, d), jnp.float32).at[:n, :].set(x)

    grid = (n_pad // tile_n,)

    # Per-step VMEM: X double-buffer + resident W/bias + out double-buffer.
    vmem_needed = 4 * (2 * tile_n * d + d * k_pad + 2 * k_pad + 2 * tile_n * k_pad)
    vmem_limit = int(min(max(vmem_needed + (1 << 20), 32 * 1024 * 1024),
                         64 * 1024 * 1024))

    out = pl.pallas_call(
        _pca_kernel,
        out_shape=jax.ShapeDtypeStruct((n_pad, k_pad), jnp.float32),
        grid_spec=pltpu.PrefetchScalarGridSpec(
            num_scalar_prefetch=0,
            grid=grid,
            in_specs=[
                pl.BlockSpec((tile_n, d), lambda i: (i, 0)),   # X row-tiles, streamed
                pl.BlockSpec((d, k_pad), lambda i: (0, 0)),    # W resident
                pl.BlockSpec((1, k_pad), lambda i: (0, 0)),    # bias resident
            ],
            out_specs=pl.BlockSpec((tile_n, k_pad), lambda i: (i, 0)),
        ),
        compiler_params=pltpu.CompilerParams(
            dimension_semantics=("parallel",),   # shardable across v7x's 2 TCs
            vmem_limit_bytes=vmem_limit,
        ),
    )(x, w, bias)

    return out[:n, :k]


if __name__ == "__main__":
    key = jax.random.PRNGKey(0)

    # --- Small deterministic test (matches the module's forward shapes). ---
    N, D, K = 8, 32, 16
    kx, kc, km = jax.random.split(key, 3)
    x = jax.random.normal(kx, (N, D), dtype=jnp.float32)
    pca_comps = jax.random.normal(kc, (K, D), dtype=jnp.float32) / jnp.sqrt(D)
    pca_mean = jax.random.normal(km, (D,), dtype=jnp.float32)

    out = pca_transform(x, pca_mean, pca_comps)
    jax.block_until_ready(out)
    ref = (x - pca_mean[None, :]) @ pca_comps.T
    assert out.shape == (N, K)
    assert jnp.allclose(out, ref, atol=1e-5, rtol=1e-5)

    # --- Slightly larger test exercising multi-tile grid, N- and K-padding. ---
    N2, D2, K2 = 300, 160, 40
    kx2, kc2, km2 = jax.random.split(jax.random.PRNGKey(1), 3)
    x2 = jax.random.normal(kx2, (N2, D2), dtype=jnp.float32)
    comps2 = jax.random.normal(kc2, (K2, D2), dtype=jnp.float32) / jnp.sqrt(D2)
    mean2 = jax.random.normal(km2, (D2,), dtype=jnp.float32)

    out2 = pca_transform(x2, mean2, comps2, tile_n=128)  # grid=(3,), padded N/K
    jax.block_until_ready(out2)
    ref2 = (x2 - mean2[None, :]) @ comps2.T
    assert out2.shape == (N2, K2)
    assert jnp.allclose(out2, ref2, atol=1e-4, rtol=1e-4)

    print("KERNEL_OK")
</pallas_src>

<mosaic_0001>
module attributes {stable_mosaic.version = 11 : i64} {
  func.func @_pca_kernel(%arg0: i32, %arg1: memref<8x32xf32, #tpu.memory_space<vmem>>, %arg2: memref<32x128xf32, #tpu.memory_space<vmem>>, %arg3: memref<1x128xf32, #tpu.memory_space<vmem>>, %arg4: memref<8x128xf32, #tpu.memory_space<vmem>>) attributes {dimension_semantics = [#tpu.dimension_semantics<parallel>], iteration_bounds = array<i64: 1>, scalar_prefetch = 0 : i64, scratch_operands = 0 : i64, tpu.core_type = #tpu.core_type<tc>, window_params = [{transform_indices = @transform_0, window_bounds = array<i64: 8, 32>}, {pipeline_mode = #tpu.pipeline_mode<synchronous>, transform_indices = @transform_1, window_bounds = array<i64: 32, 128>}, {pipeline_mode = #tpu.pipeline_mode<synchronous>, transform_indices = @transform_2, window_bounds = array<i64: 1, 128>}, {transform_indices = @transform_3, window_bounds = array<i64: 8, 128>}]} {
    %c0 = arith.constant 0 : index
    %c0_0 = arith.constant 0 : index
    %0 = vector.load %arg1[%c0, %c0_0] : memref<8x32xf32, #tpu.memory_space<vmem>>, vector<8x32xf32>
    %c0_1 = arith.constant 0 : index
    %c0_2 = arith.constant 0 : index
    %1 = vector.load %arg2[%c0_1, %c0_2] : memref<32x128xf32, #tpu.memory_space<vmem>>, vector<32x128xf32>
    %cst = arith.constant dense<0.000000e+00> : vector<8x128xf32>
    %2 = tpu.matmul %0, %1, %cst {dimension_numbers = #tpu.dot_dimension_numbers<[1], [0], [0], [1], [0, 0, 1, 1], [], []>} : vector<8x32xf32>, vector<32x128xf32>, vector<8x128xf32> -> vector<8x128xf32>
    %c0_3 = arith.constant 0 : index
    %c0_4 = arith.constant 0 : index
    %3 = vector.load %arg3[%c0_3, %c0_4] : memref<1x128xf32, #tpu.memory_space<vmem>>, vector<1x128xf32>
    %4 = vector.broadcast %3 : vector<1x128xf32> to vector<8x128xf32>
    %5 = arith.subf %2, %4 : vector<8x128xf32>
    %c0_5 = arith.constant 0 : index
    %c0_6 = arith.constant 0 : index
    %6 = vector.load %arg4[%c0_5, %c0_6] : memref<8x128xf32, #tpu.memory_space<vmem>>, vector<8x128xf32>
    tpu.vector_store %arg4[%c0_5, %c0_6], %5 {strides = array<i32>} : memref<8x128xf32, #tpu.memory_space<vmem>>, vector<8x128xf32>,
    return
  }
  func.func @transform_0(%arg0: i32) -> (i32, i32) {
    %c0_i32 = arith.constant 0 : i32
    %c0_i32_0 = arith.constant 0 : i32
    return %arg0, %c0_i32 : i32, i32
  }
  func.func @transform_1(%arg0: i32) -> (i32, i32) {
    %c0_i32 = arith.constant 0 : i32
    %c0_i32_0 = arith.constant 0 : i32
    %c0_i32_1 = arith.constant 0 : i32
    return %c0_i32, %c0_i32_0 : i32, i32
  }
  func.func @transform_2(%arg0: i32) -> (i32, i32) {
    %c0_i32 = arith.constant 0 : i32
    %c0_i32_0 = arith.constant 0 : i32
    %c0_i32_1 = arith.constant 0 : i32
    return %c0_i32, %c0_i32_0 : i32, i32
  }
  func.func @transform_3(%arg0: i32) -> (i32, i32) {
    %c0_i32 = arith.constant 0 : i32
    %c0_i32_0 = arith.constant 0 : i32
    return %arg0, %c0_i32 : i32, i32
  }
}

</mosaic_0001>

<bundles_post_ra>
// kernel: tpu_custom_call.1
= control target key start
LH: loop header
LB: loop body
LE: loop exit
PB: predicated region body
PF: predicated region fallthrough
CT: control target
= control target key end

     0   :  { %8 = vsyncpa [#allocation3], 0  ;;  %s275_s0 = inlined_call_operand.hbm [shape: f32[8,32], index: 0, kind: input, shape index: {}]   ;;  %s276_s1 = inlined_call_operand.hbm [shape: f32[32,128], index: 1, kind: input, shape index: {}]   ;;  %s277_s2 = inlined_call_operand.vmem [shape: f32[1,128], index: 2, kind: input, shape index: {}]   ;;  %s278_s3 = inlined_call_operand.hbm [shape: f32[8,128], index: 3, kind: output, shape index: {}]  }
   0x1   :  { %9 = vsyncpa [#allocation6], 0 }
   0x2   :  { %10 = vsyncpa [#allocation4], 0  ;;  %s236_s12 = smov [#allocation2]   ;;  %s237_s14 = smov [#allocation5]  }
   0x3   :  { %s17_s13 = sshll.u32 %s236_s12, 4  ;;  %s26_s15 = sshll.u32 %s237_s14, 4  ;;  %s18_s13 = int_to_ptr.vmem [resolvable:$true] %s17_s13  ;;  %s27_s15 = int_to_ptr.vmem [resolvable:$true] %s26_s15 }
   0x4   :  { %s178_s16 = scalar_lea.vmem %s18_s13, 128  ;;  %p183_p1 = scmp.lt.s32.totalorder %s18_s13, %s18_s13 }
   0x5   :  { %p179_p0 = scmp.ne.s32.totalorder %s18_s13, %s178_s16  ;;  %p184_p2 = scmp.lt.s32.totalorder %s178_s16, %s178_s16 }
   0x7   :  { %p185_p3 = por %p184_p2, %p183_p1 }
   0x9   :  { %p186_p4 = pnand %p185_p3, %p179_p0 }
   0xb   :  { %189 = shalt.err (!%p186_p4)
}
   0xc   :  { %20 = dma.hbm_to_vmem [thread:$0]  %s275_s0, 128, %s18_s13, [#allocation3]  }
   0xd   :  { %s198_s19 = scalar_lea.vmem %s27_s15, 512  ;;  %p203_p6 = scmp.lt.s32.totalorder %s27_s15, %s27_s15 }
   0xe   :  { %p199_p5 = scmp.ne.s32.totalorder %s27_s15, %s198_s19  ;;  %p204_p7 = scmp.lt.s32.totalorder %s198_s19, %s198_s19 }
  0x10   :  { %p205_p8 = por %p204_p7, %p203_p6 }
  0x12   :  { %p206_p9 = pnand %p205_p8, %p199_p5 }
  0x14   :  { %209 = shalt.err (!%p206_p9)
}
  0x15   :  { %s238_s20 = smov 128   ;;  %s239_s21 = smov 8  }
  0x16   :  { %32 = dma.hbm_to_vmem [thread:$0]  %s276_s1, 512, %s27_s15, [#allocation6], %s238_s20, %s238_s20, %s239_s21  }
  0x17   :  { %230 = dma.done.wait [#allocation3], 128  }
  0x18   :  { %231 = vsyncadd [#allocation3], 4294967168 }
  0x19   :  { %232 = dma.done.wait [#allocation6], 512  }
  0x1a   :  { %233 = vsyncadd [#allocation6], 4294966784  ;;  %v240_v0 = vmov 0.0   ;;  %vm241_vm0 = vmmov 0   ;;  %v45_v1 = vld [vmem:[#allocation5 + $0x18] sm:$0xff]  ;;  %v44_v2 = vld [vmem:[#allocation5 + $0x10] sm:$0xff] }
  0x1b   :  { %152 = vmatprep.subr.mxu0 %v240_v0  ;;  %160 = vmatprep.mubr.msk.f32.mxu0 %vm241_vm0, %v240_v0  ;;  %v43_v3 = vld [vmem:[#allocation5 + $0x8] sm:$0xff]  ;;  %v42_v4 = vld [vmem:[#allocation5] sm:$0xff]  ;;  %v41_v5 = vld [vmem:[#allocation2] sm:$0xff]  ;;  %vm46_vm1 = vcmask 261120   ;;  %s242_s24 = smov [#allocation7]  }
  0x1c   :  { %153 = vmatpush3.msra.mxu0 %v45_v1  ;;  %v146_v6 = vld [vmem:[%s277_s2] ss:$0 sm:$0xff]  ;;  %s135_s25 = sshll.u32 %s242_s24, 4  ;;  %s136_s25 = int_to_ptr.vmem [resolvable:$true] %s135_s25 }
  0x1d   :  { %154 = vmatprep.subr.mxu0 %v240_v0  ;;  %s210_s26 = scalar_lea.vmem %s136_s25, 128  ;;  %p215_p11 = scmp.lt.s32.totalorder %s136_s25, %s136_s25 }
  0x1e   :  { %155 = vmatpush3.msra.mxu0 %v44_v2  ;;  %p211_p10 = scmp.ne.s32.totalorder %s136_s25, %s210_s26  ;;  %p216_p12 = scmp.lt.s32.totalorder %s210_s26, %s210_s26 }
  0x1f   :  { %156 = vmatprep.subr.mxu0 %v240_v0 }
  0x20   :  { %157 = vmatpush3.msra.mxu0 %v43_v3  ;;  %p217_p13 = por %p216_p12, %p215_p11 }
  0x21   :  { %158 = vmatprep.subr.mxu0 %v240_v0 }
  0x22   :  { %159 = vmatpush3.msra.mxu0 %v42_v4  ;;  %p218_p0 = pnand %p217_p13, %p211_p10 }
  0x23   :  { %161 = vmatmul.mubr.msk.f32.vlgmr.msra.gmra.mxu0 %vm46_vm1, %v41_v5 }
  0xe3   :  { %v116_v7 = vpop.f32.mrf.mxu0 }
  0xe4   :  { %v127_v8 = vsub.f32 %v116_v7, %v146_v6 }
  0xe5   :  { %v162_v9 = vpop.f32.mrf.mxu0 }
  0xe6   :  { %128 = vst [vmem:[#allocation7] sm:$0xff] %v127_v8 }
  0xe7   :  { %221 = shalt.err (!%p218_p0)
}
  0xe8   :  { %138 = dma.vmem_to_hbm [thread:$0]  %s136_s25, 128, %s278_s3, [#allocation4]  }
  0xe9   :  { %234 = dma.done.wait [#allocation4], 128  }
  0xea   :  { %235 = vsyncadd [#allocation4], 4294967168 }
  0xeb   :  { %142 = vsyncpa [#allocation3], 1 }
  0xec   :  { %143 = vsyncpa [#allocation6], 1 }
  0xed   :  { %144 = vsyncpa [#allocation4], 1 }

</bundles_post_ra>
